<compile_context>
chip_gen: v7x
topology: tpu7x:2x2x1
jax: 0.10.0
libtpu: 0.0.40
codegen_flags: <defaults>
</compile_context>

<pallas_src>
import math

import jax
import jax.numpy as jnp
from jax import lax
from jax.experimental import pallas as pl
from jax.experimental.pallas import tpu as pltpu

_INV_SQRT2 = 1.0 / math.sqrt(2.0)


def _gelu_xai_kernel(x_ref, o_ref):
    xf = x_ref[...].astype(jnp.float32)
    # out = x * gelu(x) / (x + 1e-6),  gelu(x) = 0.5 * x * (1 + erf(x/sqrt(2)))
    #     = (x*x) * (0.5 + 0.5*erf(x/sqrt(2))) * reciprocal(x + 1e-6)
    erf_t = lax.erf(xf * _INV_SQRT2)                     # VPU polynomial
    recip = pl.reciprocal(xf + 1e-6, approx=False)       # EUP (+ exact refine)
    out = (xf * xf) * (0.5 + 0.5 * erf_t) * recip
    o_ref[...] = out.astype(o_ref.dtype)


def gelu_activation_xai(
    x: jax.Array,
    *,
    target_tile_bytes: int = 4 << 20,   # ~4 MiB tile; in+out double-buffered ~16 MiB
) -> jax.Array:
    """Elementwise GELUActivationXAI forward pass as a Pallas TPU kernel."""
    orig_shape = x.shape
    n = x.size
    if n == 0:
        return x
    itemsize = x.dtype.itemsize

    # ---- Pick a zero-copy 2D view (rows, width); reshape is metadata-only. ----
    if n % 128 == 0:
        # Lane-dense slab: widest power-of-two width (<=1024) dividing n.
        width = next(w for w in (1024, 512, 256, 128) if n % w == 0)
    elif x.ndim >= 2:
        # Ragged element count: keep the natural trailing dim (block last dim
        # equals the full array dim, so any value is legal). Lane-sparse but
        # avoids the full-array pad/slice HBM copies.
        width = orig_shape[-1]
    else:
        width = n
    rows = n // width
    x2d = x.reshape(rows, width)

    # ---- Tile sizing: keep ~target_tile_bytes per tile regardless of dtype. ----
    rows_per_tile = (target_tile_bytes // max(width * itemsize, 1)) // 8 * 8
    rows_per_tile = max(rows_per_tile, 8)
    if rows_per_tile >= rows:
        rows_per_tile = rows            # single block along rows (full dim: legal)
    grid = (pl.cdiv(rows, rows_per_tile),)   # partial trailing block is fine

    out2d = pl.pallas_call(
        _gelu_xai_kernel,
        out_shape=jax.ShapeDtypeStruct((rows, width), x.dtype),
        grid=grid,
        in_specs=[pl.BlockSpec((rows_per_tile, width), lambda i: (i, 0))],
        out_specs=pl.BlockSpec((rows_per_tile, width), lambda i: (i, 0)),
        compiler_params=pltpu.CompilerParams(
            dimension_semantics=("parallel",),
            vmem_limit_bytes=32 << 20,
        ),
        cost_estimate=pl.CostEstimate(
            flops=10 * n,
            transcendentals=2 * n,              # erf + reciprocal per element
            bytes_accessed=2 * n * itemsize,
        ),
    )(x2d)

    return out2d.reshape(orig_shape)


def _reference(x: jax.Array) -> jax.Array:
    xf = x.astype(jnp.float32)
    gelu = 0.5 * xf * (1.0 + lax.erf(xf * jnp.float32(_INV_SQRT2)))
    return (xf * (gelu / (xf + 1e-6))).astype(x.dtype)


if __name__ == "__main__":
    key = jax.random.PRNGKey(0)
    # NCHW input, small shapes: batch=2, channels=4, spatial=16x16
    x = jax.random.normal(key, (2, 4, 16, 16), dtype=jnp.float32)

    out = jax.block_until_ready(gelu_activation_xai(x))
    ref = _reference(x)
    assert out.shape == x.shape and out.dtype == x.dtype
    assert jnp.allclose(out, ref, atol=1e-5, rtol=1e-5), "mismatch vs reference"

    # Exercise the multi-tile aligned path and the ragged (zero-copy) path.
    for shape in ((8, 64, 64, 64), (3, 7, 33, 65)):
        xl = jax.random.normal(jax.random.PRNGKey(1), shape, dtype=jnp.float32)
        ol = jax.block_until_ready(gelu_activation_xai(xl))
        assert jnp.allclose(ol, _reference(xl), atol=1e-5, rtol=1e-5), "mismatch"

    print("KERNEL_OK")
</pallas_src>

<mosaic_0001>
module attributes {stable_mosaic.version = 11 : i64} {
  func.func @_gelu_xai_kernel(%arg0: i32, %arg1: memref<2x1024xf32, #tpu.memory_space<vmem>>, %arg2: memref<2x1024xf32, #tpu.memory_space<vmem>>) attributes {dimension_semantics = [#tpu.dimension_semantics<parallel>], iteration_bounds = array<i64: 1>, scalar_prefetch = 0 : i64, scratch_operands = 0 : i64, tpu.core_type = #tpu.core_type<tc>, window_params = [{transform_indices = @transform_0, window_bounds = array<i64: 2, 1024>}, {transform_indices = @transform_1, window_bounds = array<i64: 2, 1024>}]} {
    %c0 = arith.constant 0 : index
    %c0_0 = arith.constant 0 : index
    %0 = vector.load %arg1[%c0, %c0_0] : memref<2x1024xf32, #tpu.memory_space<vmem>>, vector<2x1024xf32>
    %cst = arith.constant 0.707106769 : f32
    %1 = vector.broadcast %cst : f32 to vector<2x1024xf32>
    %2 = arith.mulf %0, %1 : vector<2x1024xf32>
    %3 = math.erf %2 : vector<2x1024xf32>
    %cst_1 = arith.constant 9.99999997E-7 : f32
    %4 = vector.broadcast %cst_1 : f32 to vector<2x1024xf32>
    %5 = arith.addf %0, %4 : vector<2x1024xf32>
    %6 = tpu.reciprocal %5 : vector<2x1024xf32> -> vector<2x1024xf32>
    %7 = arith.mulf %0, %0 : vector<2x1024xf32>
    %cst_2 = arith.constant 5.000000e-01 : f32
    %8 = vector.broadcast %cst_2 : f32 to vector<2x1024xf32>
    %9 = arith.mulf %8, %3 : vector<2x1024xf32>
    %cst_3 = arith.constant 5.000000e-01 : f32
    %10 = vector.broadcast %cst_3 : f32 to vector<2x1024xf32>
    %11 = arith.addf %10, %9 : vector<2x1024xf32>
    %12 = arith.mulf %7, %11 : vector<2x1024xf32>
    %13 = arith.mulf %12, %6 : vector<2x1024xf32>
    %c0_4 = arith.constant 0 : index
    %c0_5 = arith.constant 0 : index
    %14 = vector.load %arg2[%c0_4, %c0_5] : memref<2x1024xf32, #tpu.memory_space<vmem>>, vector<2x1024xf32>
    tpu.vector_store %arg2[%c0_4, %c0_5], %13 {strides = array<i32>} : memref<2x1024xf32, #tpu.memory_space<vmem>>, vector<2x1024xf32>,
    return
  }
  func.func @transform_0(%arg0: i32) -> (i32, i32) {
    %c0_i32 = arith.constant 0 : i32
    %c0_i32_0 = arith.constant 0 : i32
    return %arg0, %c0_i32 : i32, i32
  }
  func.func @transform_1(%arg0: i32) -> (i32, i32) {
    %c0_i32 = arith.constant 0 : i32
    %c0_i32_0 = arith.constant 0 : i32
    return %arg0, %c0_i32 : i32, i32
  }
}

</mosaic_0001>

<bundles_post_ra>
// kernel: tpu_custom_call.1
= control target key start
LH: loop header
LB: loop body
LE: loop exit
PB: predicated region body
PF: predicated region fallthrough
CT: control target
= control target key end

     0   :  { %6 = vsyncpa [#allocation3], 0  ;;  %s152_s0 = inlined_call_operand.hbm [shape: f32[2,1024], index: 0, kind: input, shape index: {}]   ;;  %s153_s1 = inlined_call_operand.hbm [shape: f32[2,1024], index: 1, kind: output, shape index: {}]  }
   0x1   :  { %7 = vsyncpa [#allocation4], 0  ;;  %s116_s6 = smov [#allocation2]   ;;  %s68_s10 = scalar_lea.hbm %s152_s0, 256 }
   0x2   :  { %s14_s7 = sshll.u32 %s116_s6, 4  ;;  %p69_p0 = scmp.ne.s32.totalorder %s152_s0, %s68_s10  ;;  %s15_s7 = int_to_ptr.vmem [resolvable:$true] %s14_s7 }
   0x3   :  { %p72_p1 = scmp.lt.u32.totalorder %s68_s10, %s152_s0 }
   0x5   :  { %p74_p2 = pnand %p72_p1, %p69_p0 }
   0x7   :  { %77 = shalt.err (!%p74_p2)
}
   0x8   :  { %s78_s15 = scalar_lea.vmem %s15_s7, 256  ;;  %p83_p4 = scmp.lt.s32.totalorder %s15_s7, %s15_s7 }
   0x9   :  { %p79_p3 = scmp.ne.s32.totalorder %s15_s7, %s78_s15  ;;  %p84_p5 = scmp.lt.s32.totalorder %s78_s15, %s78_s15 }
   0xb   :  { %p85_p6 = por %p84_p5, %p83_p4 }
   0xd   :  { %p86_p7 = pnand %p85_p6, %p79_p3 }
   0xf   :  { %89 = shalt.err (!%p86_p7)
}
  0x10   :  { %17 = dma.hbm_to_vmem [thread:$0]  %s152_s0, 256, %s15_s7, [#allocation3]  }
  0x11   :  { %112 = dma.done.wait [#allocation3], 256  }
  0x12   :  { %113 = vsyncadd [#allocation3], 4294967040  ;;  %v21_v0 = vld [vmem:[#allocation2] sm:$0xff]  ;;  %v22_v1 = vld [vmem:[#allocation2 + $0x8] sm:$0xff]  ;;  %s117_s0 = smov [#allocation5]  }
  0x13   :  { %v23_v2 = vmul.f32 0.70710677, %v21_v0  ;;  %v24_v3 = vmul.f32 0.70710677, %v22_v1  ;;  %v27_v4 = vadd.f32 1e-06, %v21_v0  ;;  %v31_v7 = vmul.f32 %v21_v0, %v21_v0 }
  0x14   :  { %v28_v5 = vadd.f32 1e-06, %v22_v1  ;;  %v32_v11 = vmul.f32 %v22_v1, %v22_v1  ;;  %s49_s18 = sshll.u32 %s117_s0, 4  ;;  %s50_s18 = int_to_ptr.vmem [resolvable:$true] %s49_s18 }
  0x15   :  { %60 = verf.f32 %v23_v2  ;;  %s90_s19 = scalar_lea.vmem %s50_s18, 256  ;;  %p95_p9 = scmp.lt.s32.totalorder %s50_s18, %s50_s18 }
  0x16   :  { %62 = verf.f32 %v24_v3  ;;  %p91_p8 = scmp.ne.s32.totalorder %s50_s18, %s90_s19  ;;  %p96_p10 = scmp.lt.s32.totalorder %s90_s19, %s90_s19 }
  0x17   :  { %64 = vrcp.f32 %v27_v4 }
  0x18   :  { %66 = vrcp.f32 %v28_v5  ;;  %p97_p11 = por %p96_p10, %p95_p9 }
  0x1a   :  { %p98_p12 = pnand %p97_p11, %p91_p8 }
  0x1f   :  { %v61_v6 = vpop.eup %60 }
  0x20   :  { %v33_v8 = vmul.f32 0.5, %v61_v6  ;;  %v63_v9 = vpop.eup %62 }
  0x21   :  { %v34_v12 = vmul.f32 0.5, %v63_v9  ;;  %v65_v13 = vpop.eup %64 }
  0x22   :  { %v35_v10 = vadd.f32 0.5, %v33_v8  ;;  %v67_v16 = vpop.eup %66 }
  0x23   :  { %v36_v15 = vadd.f32 0.5, %v34_v12 }
  0x24   :  { %v37_v14 = vmul.f32 %v35_v10, %v31_v7 }
  0x25   :  { %v38_v18 = vmul.f32 %v36_v15, %v32_v11 }
  0x26   :  { %v39_v17 = vmul.f32 %v65_v13, %v37_v14 }
  0x27   :  { %v40_v19 = vmul.f32 %v67_v16, %v38_v18 }
  0x28   :  { %41 = vst [vmem:[#allocation5] sm:$0xff] %v39_v17 }
  0x29   :  { %42 = vst [vmem:[#allocation5 + $0x8] sm:$0xff] %v40_v19 }
  0x2a   :  { %101 = shalt.err (!%p98_p12)
}
  0x2b   :  { %s102_s22 = scalar_lea.hbm %s153_s1, 256 }
  0x2c   :  { %p103_p13 = scmp.ne.s32.totalorder %s153_s1, %s102_s22  ;;  %p106_p0 = scmp.lt.u32.totalorder %s102_s22, %s153_s1 }
  0x2e   :  { %p108_p1 = pnand %p106_p0, %p103_p13 }
  0x30   :  { %111 = shalt.err (!%p108_p1)
}
  0x31   :  { %52 = dma.vmem_to_hbm [thread:$0]  %s50_s18, 256, %s153_s1, [#allocation4]  }
  0x32   :  { %114 = dma.done.wait [#allocation4], 256  }
  0x33   :  { %115 = vsyncadd [#allocation4], 4294967040 }
  0x34   :  { %56 = vsyncpa [#allocation3], 1 }
  0x35   :  { %57 = vsyncpa [#allocation4], 1 }

</bundles_post_ra>
